<compile_context>
chip_gen: v7x
topology: tpu7x:2x2x1
jax: 0.10.0
libtpu: 0.0.40
codegen_flags: <defaults>
</compile_context>

<pallas_src>
import jax
import jax.numpy as jnp
from jax.experimental import pallas as pl
from jax.experimental.pallas import tpu as pltpu


def _sublane_multiple(dtype):
    # Rows per packed sublane group: 8 for 4-byte, 16 for 2-byte, 32 for 1-byte.
    return max(8, 32 // jnp.dtype(dtype).itemsize)


def _vmem_budget_bytes():
    # ~75% of per-core physical VMEM (leaves headroom for Mosaic internal
    # scratch): ~96 MiB on v5e/v6e (128 MiB), ~48 MiB on v7x (64 MiB).
    # Fall back to the most constrained generation if the query fails.
    try:
        cap = int(pltpu.get_tpu_info().vmem_capacity_bytes)
    except Exception:
        cap = 64 * 1024 * 1024
    return cap * 3 // 4


def lora_kernel(x_ref, wd_t_ref, wu_t_ref, o_ref):
    # x_ref   : (TM, H)      activation tile (pipelined over the grid)
    # wd_t_ref: (H, r_pad)   down-proj weight, pre-transposed, rank zero-padded
    # wu_t_ref: (r_pad, H)   up-proj weight,   pre-transposed, rank zero-padded
    x = x_ref[...]
    # down: (TM, H) @ (H, r_pad) -> (TM, r_pad), f32 accumulate on the MXU
    h = jnp.dot(x, wd_t_ref[...], preferred_element_type=jnp.float32)
    # up:   (TM, r_pad) @ (r_pad, H) -> (TM, H), f32 accumulate
    y = jnp.dot(h.astype(x.dtype), wu_t_ref[...],
                preferred_element_type=jnp.float32)
    o_ref[...] = y.astype(o_ref.dtype)


def lora_adapter(x, w_down, w_up, *, max_tm=2048):
    """LoRA forward: (x @ w_down.T) @ w_up.T.

    x      : (..., H) activations
    w_down : (rank, H)  -- nn.Linear(H, rank, bias=False).weight
    w_up   : (H, rank)  -- nn.Linear(rank, H, bias=False).weight
    """
    orig_shape = x.shape
    H = orig_shape[-1]
    rank = w_down.shape[0]
    M = 1
    for d in orig_shape[:-1]:
        M *= d
    x2d = x.reshape(M, H)

    # ---- One-time weight layout plumbing (outside the kernel) --------------
    # TODO(synk): if adapter weights are static at inference, store them
    # pre-transposed / pre-padded to skip this tiny per-call transpose.
    # NOTE: for production, keep H a multiple of 128 (lane-dense output); the
    # small demo H=32 is not representative and just uses masked stores.
    r_pad = max(8, ((rank + 7) // 8) * 8)   # sublane-align rank, zero-pad
    wd_t = jnp.zeros((H, r_pad), w_down.dtype).at[:, :rank].set(w_down.T)
    wu_t = jnp.zeros((r_pad, H), w_up.dtype).at[:rank, :].set(w_up.T)

    # ---- Tile-size selection: shape + generation aware ---------------------
    itemsize = jnp.dtype(x.dtype).itemsize
    w_itemsize = jnp.dtype(w_down.dtype).itemsize
    sub = _sublane_multiple(x.dtype)

    budget = _vmem_budget_bytes()
    weight_bytes = 2 * H * r_pad * w_itemsize          # resident, single-buffered
    per_row_bytes = 4 * H * itemsize                    # 2x-buffered x + out tiles
    tile_budget = max(budget - weight_bytes, per_row_bytes * sub)
    tm = tile_budget // per_row_bytes
    tm = min(tm, max_tm)                                # diminishing returns past ~2k rows
    if tm >= M:
        tm = M                                          # full-extent block (always legal)
        if M >= 128:
            # Guarantee >= 2 tiles so the "parallel" axis shards across both
            # TensorCores on v7x (neutral on single-TC v5e/v6e).
            half = (M + 1) // 2
            tm = ((half + sub - 1) // sub) * sub
    else:
        tm = max(sub, (tm // sub) * sub)
    grid_m = pl.cdiv(M, tm)

    cost = pl.CostEstimate(
        flops=4 * M * H * r_pad,
        transcendentals=0,
        bytes_accessed=2 * M * H * itemsize + 2 * H * r_pad * w_itemsize,
    )

    def _make_call(single_buffer_weights):
        if single_buffer_weights:
            w_specs = [
                pl.BlockSpec((H, r_pad), lambda i: (0, 0),
                             pipeline_mode=pl.Buffered(1)),
                pl.BlockSpec((r_pad, H), lambda i: (0, 0),
                             pipeline_mode=pl.Buffered(1)),
            ]
        else:
            w_specs = [
                pl.BlockSpec((H, r_pad), lambda i: (0, 0)),
                pl.BlockSpec((r_pad, H), lambda i: (0, 0)),
            ]
        return pl.pallas_call(
            lora_kernel,
            out_shape=jax.ShapeDtypeStruct((M, H), x.dtype),
            grid_spec=pltpu.PrefetchScalarGridSpec(
                num_scalar_prefetch=0,
                grid=(grid_m,),
                in_specs=[pl.BlockSpec((tm, H), lambda i: (i, 0))] + w_specs,
                out_specs=pl.BlockSpec((tm, H), lambda i: (i, 0)),
            ),
            compiler_params=pltpu.CompilerParams(
                # Independent M tiles -> shard across TCs on v7x megacore.
                dimension_semantics=("parallel",),
                vmem_limit_bytes=budget,
            ),
            cost_estimate=cost,
        )

    try:
        out2d = _make_call(True)(x2d, wd_t, wu_t)
    except Exception:
        # pipeline_mode=Buffered(1) not supported on this jax version: fall
        # back to default double-buffered weights (extra H*r_pad copy is
        # covered by the 25% budget headroom).
        out2d = _make_call(False)(x2d, wd_t, wu_t)

    return out2d.reshape(orig_shape)


if __name__ == "__main__":
    # Shapes consistent with the module's forward: batch=2, seq=8,
    # in_features=32, rank=4.  nn.Linear stores weight as (out, in).
    B, S, H, RANK = 2, 8, 32, 4

    key = jax.random.PRNGKey(0)
    kx, kd, ku = jax.random.split(key, 3)

    x = jax.random.normal(kx, (B, S, H), dtype=jnp.float32)
    w_down = jax.random.normal(kd, (RANK, H), dtype=jnp.float32) * 0.1  # down.weight
    w_up = jax.random.normal(ku, (H, RANK), dtype=jnp.float32) * 0.1    # up.weight

    y = jax.block_until_ready(lora_adapter(x, w_down, w_up))
    y_ref = (x @ w_down.T) @ w_up.T
    assert y.shape == (B, S, H)
    assert jnp.allclose(y, y_ref, atol=1e-5, rtol=1e-5)

    # Second check: ragged last M tile (M=18 not a multiple of TM=16) and the
    # bf16 sublane-packing / dtype-rounding path.
    S2 = 9
    x2 = jax.random.normal(kx, (B, S2, H), dtype=jnp.bfloat16)
    wd2 = w_down.astype(jnp.bfloat16)
    wu2 = w_up.astype(jnp.bfloat16)
    y2 = jax.block_until_ready(lora_adapter(x2, wd2, wu2, max_tm=16))
    y2_ref = (x2.astype(jnp.float32) @ wd2.T.astype(jnp.float32)) \
        @ wu2.T.astype(jnp.float32)
    assert y2.shape == (B, S2, H)
    assert jnp.allclose(y2.astype(jnp.float32), y2_ref, atol=3e-2, rtol=3e-2)

    print("KERNEL_OK")
</pallas_src>

<mosaic_0001>
module attributes {stable_mosaic.version = 11 : i64} {
  func.func @lora_kernel(%arg0: i32, %arg1: memref<16x32xf32, #tpu.memory_space<vmem>>, %arg2: memref<32x8xf32, #tpu.memory_space<vmem>>, %arg3: memref<8x32xf32, #tpu.memory_space<vmem>>, %arg4: memref<16x32xf32, #tpu.memory_space<vmem>>) attributes {dimension_semantics = [#tpu.dimension_semantics<parallel>], iteration_bounds = array<i64: 1>, scalar_prefetch = 0 : i64, scratch_operands = 0 : i64, tpu.core_type = #tpu.core_type<tc>, window_params = [{transform_indices = @transform_0, window_bounds = array<i64: 16, 32>}, {pipeline_mode = #tpu.pipeline_mode<synchronous>, transform_indices = @transform_1, window_bounds = array<i64: 32, 8>}, {pipeline_mode = #tpu.pipeline_mode<synchronous>, transform_indices = @transform_2, window_bounds = array<i64: 8, 32>}, {transform_indices = @transform_3, window_bounds = array<i64: 16, 32>}]} {
    %c0 = arith.constant 0 : index
    %c0_0 = arith.constant 0 : index
    %0 = vector.load %arg1[%c0, %c0_0] : memref<16x32xf32, #tpu.memory_space<vmem>>, vector<16x32xf32>
    %c0_1 = arith.constant 0 : index
    %c0_2 = arith.constant 0 : index
    %1 = vector.load %arg2[%c0_1, %c0_2] : memref<32x8xf32, #tpu.memory_space<vmem>>, vector<32x8xf32>
    %cst = arith.constant dense<0.000000e+00> : vector<16x8xf32>
    %2 = tpu.matmul %0, %1, %cst {dimension_numbers = #tpu.dot_dimension_numbers<[1], [0], [0], [1], [0, 0, 1, 1], [], []>} : vector<16x32xf32>, vector<32x8xf32>, vector<16x8xf32> -> vector<16x8xf32>
    %c0_3 = arith.constant 0 : index
    %c0_4 = arith.constant 0 : index
    %3 = vector.load %arg3[%c0_3, %c0_4] : memref<8x32xf32, #tpu.memory_space<vmem>>, vector<8x32xf32>
    %cst_5 = arith.constant dense<0.000000e+00> : vector<16x32xf32>
    %4 = tpu.matmul %2, %3, %cst_5 {dimension_numbers = #tpu.dot_dimension_numbers<[1], [0], [0], [1], [0, 0, 1, 1], [], []>} : vector<16x8xf32>, vector<8x32xf32>, vector<16x32xf32> -> vector<16x32xf32>
    %c0_6 = arith.constant 0 : index
    %c0_7 = arith.constant 0 : index
    %5 = vector.load %arg4[%c0_6, %c0_7] : memref<16x32xf32, #tpu.memory_space<vmem>>, vector<16x32xf32>
    tpu.vector_store %arg4[%c0_6, %c0_7], %4 {strides = array<i32>} : memref<16x32xf32, #tpu.memory_space<vmem>>, vector<16x32xf32>,
    return
  }
  func.func @transform_0(%arg0: i32) -> (i32, i32) {
    %c0_i32 = arith.constant 0 : i32
    %c0_i32_0 = arith.constant 0 : i32
    return %arg0, %c0_i32 : i32, i32
  }
  func.func @transform_1(%arg0: i32) -> (i32, i32) {
    %c0_i32 = arith.constant 0 : i32
    %c0_i32_0 = arith.constant 0 : i32
    %c0_i32_1 = arith.constant 0 : i32
    return %c0_i32, %c0_i32_0 : i32, i32
  }
  func.func @transform_2(%arg0: i32) -> (i32, i32) {
    %c0_i32 = arith.constant 0 : i32
    %c0_i32_0 = arith.constant 0 : i32
    %c0_i32_1 = arith.constant 0 : i32
    return %c0_i32, %c0_i32_0 : i32, i32
  }
  func.func @transform_3(%arg0: i32) -> (i32, i32) {
    %c0_i32 = arith.constant 0 : i32
    %c0_i32_0 = arith.constant 0 : i32
    return %arg0, %c0_i32 : i32, i32
  }
}

module attributes {stable_mosaic.version = 11 : i64} {
  func.func @lora_kernel(%arg0: i32, %arg1: memref<16x32xf32, #tpu.memory_space<vmem>>, %arg2: memref<32x8xf32, #tpu.memory_space<vmem>>, %arg3: memref<8x32xf32, #tpu.memory_space<vmem>>, %arg4: memref<16x32xf32, #tpu.memory_space<vmem>>) attributes {dimension_semantics = [#tpu.dimension_semantics<parallel>], iteration_bounds = array<i64: 1>, scalar_prefetch = 0 : i64, scratch_operands = 0 : i64, tpu.core_type = #tpu.core_type<tc>, window_params = [{transform_indices = @transform_0, window_bounds = array<i64: 16, 32>}, {pipeline_mode = #tpu.pipeline_mode<synchronous>, transform_indices = @transform_1, window_bounds = array<i64: 32, 8>}, {pipeline_mode = #tpu.pipeline_mode<synchronous>, transform_indices = @transform_2, window_bounds = array<i64: 8, 32>}, {transform_indices = @transform_3, window_bounds = array<i64: 16, 32>}]} {
    %c0 = arith.constant 0 : index
    %c0_0 = arith.constant 0 : index
    %0 = vector.load %arg1[%c0, %c0_0] : memref<16x32xf32, #tpu.memory_space<vmem>>, vector<16x32xf32>
    %c0_1 = arith.constant 0 : index
    %c0_2 = arith.constant 0 : index
    %1 = vector.load %arg2[%c0_1, %c0_2] : memref<32x8xf32, #tpu.memory_space<vmem>>, vector<32x8xf32>
    %cst = arith.constant dense<0.000000e+00> : vector<16x8xf32>
    %2 = tpu.matmul %0, %1, %cst {dimension_numbers = #tpu.dot_dimension_numbers<[1], [0], [0], [1], [0, 0, 1, 1], [], []>} : vector<16x32xf32>, vector<32x8xf32>, vector<16x8xf32> -> vector<16x8xf32>
    %c0_3 = arith.constant 0 : index
    %c0_4 = arith.constant 0 : index
    %3 = vector.load %arg3[%c0_3, %c0_4] : memref<8x32xf32, #tpu.memory_space<vmem>>, vector<8x32xf32>
    %cst_5 = arith.constant dense<0.000000e+00> : vector<16x32xf32>
    %4 = tpu.matmul %2, %3, %cst_5 {dimension_numbers = #tpu.dot_dimension_numbers<[1], [0], [0], [1], [0, 0, 1, 1], [], []>} : vector<16x8xf32>, vector<8x32xf32>, vector<16x32xf32> -> vector<16x32xf32>
    %c0_6 = arith.constant 0 : index
    %c0_7 = arith.constant 0 : index
    %5 = vector.load %arg4[%c0_6, %c0_7] : memref<16x32xf32, #tpu.memory_space<vmem>>, vector<16x32xf32>
    tpu.vector_store %arg4[%c0_6, %c0_7], %4 {strides = array<i32>} : memref<16x32xf32, #tpu.memory_space<vmem>>, vector<16x32xf32>,
    return
  }
  func.func @transform_0(%arg0: i32) -> (i32, i32) {
    %c0_i32 = arith.constant 0 : i32
    %c0_i32_0 = arith.constant 0 : i32
    return %arg0, %c0_i32 : i32, i32
  }
  func.func @transform_1(%arg0: i32) -> (i32, i32) {
    %c0_i32 = arith.constant 0 : i32
    %c0_i32_0 = arith.constant 0 : i32
    %c0_i32_1 = arith.constant 0 : i32
    return %c0_i32, %c0_i32_0 : i32, i32
  }
  func.func @transform_2(%arg0: i32) -> (i32, i32) {
    %c0_i32 = arith.constant 0 : i32
    %c0_i32_0 = arith.constant 0 : i32
    %c0_i32_1 = arith.constant 0 : i32
    return %c0_i32, %c0_i32_0 : i32, i32
  }
  func.func @transform_3(%arg0: i32) -> (i32, i32) {
    %c0_i32 = arith.constant 0 : i32
    %c0_i32_0 = arith.constant 0 : i32
    return %arg0, %c0_i32 : i32, i32
  }
}

</mosaic_0001>

<bundles_post_ra>
// kernel: tpu_custom_call.1
= control target key start
LH: loop header
LB: loop body
LE: loop exit
PB: predicated region body
PF: predicated region fallthrough
CT: control target
= control target key end

     0   :  { %vm21_vm0 = vcmask 261120   ;;  %s328_s0 = inlined_call_operand.vmem [shape: f32[16,32], index: 0, kind: input, shape index: {}]   ;;  %s329_s1 = inlined_call_operand.vmem [shape: f32[32,8], index: 1, kind: input, shape index: {}]   ;;  %s330_s2 = inlined_call_operand.vmem [shape: f32[8,32], index: 2, kind: input, shape index: {}]   ;;  %s331_s3 = inlined_call_operand.hbm [shape: f32[16,32], index: 3, kind: output, shape index: {}]  }
   0x1   :  { %v17_v0 = vld [vmem:[%s329_s1] sm:$0xff]  ;;  %v18_v1 = vld [vmem:[%s329_s1 + $0x8] sm:$0xff]  ;;  %v19_v2 = vld [vmem:[%s329_s1 + $0x10] sm:$0xff] }
   0x2   :  { %v233_v3 = vpack.c.bf16 %v18_v1, %v17_v0  ;;  %v20_v4 = vld [vmem:[%s329_s1 + $0x18] sm:$0xff]  ;;  %v15_v5 = vld [vmem:[%s328_s0] sm:$0xff] }
   0x3   :  { %v237_v6 = vpack.c.bf16 %v20_v4, %v19_v2  ;;  %225 = vmatprep.mubr.msk.f32.mxu0 %vm21_vm0, %v15_v5 }
   0x4   :  { %8 = vsyncpa [#allocation3], 0  ;;  %234 = vmatprep.subr.bf16.mxu0 %v233_v3  ;;  %v16_v7 = vld [vmem:[%s328_s0 + $0x8] sm:$0xff]  ;;  %v103_v8 = vld [vmem:[%s330_s2] sm:$0xff]  ;;  %vm104_vm1 = vcmask 64512   ;;  %s268_s25 = smov [#allocation2]  }
   0x5   :  { %236 = vmatpush3.bf16.msra.mxu0 %v233_v3  ;;  %228 = vmatprep.subr.mxu1 %v103_v8  ;;  %s193_s26 = sshll.u32 %s268_s25, 4  ;;  %s194_s26 = int_to_ptr.vmem [resolvable:$true] %s193_s26 }
   0x6   :  { %238 = vmatprep.subr.bf16.mxu0 %v237_v6  ;;  %229 = vmatpush3.msra.mxu1 %v103_v8  ;;  %s244_s0 = scalar_lea.vmem %s194_s26, 256  ;;  %p249_p1 = scmp.lt.s32.totalorder %s194_s26, %s194_s26 }
   0x7   :  { %p245_p0 = scmp.ne.s32.totalorder %s194_s26, %s244_s0  ;;  %p250_p2 = scmp.lt.s32.totalorder %s244_s0, %s244_s0 }
   0x9   :  { %240 = vmatpush3.bf16.msra.mxu0 %v237_v6  ;;  %p251_p3 = por %p250_p2, %p249_p1 }
   0xb   :  { %p252_p4 = pnand %p251_p3, %p245_p0 }
   0xc   :  { %226 = vmatmul.mubr.msk.f32.vlgmr.msra.gmra.mrb[0].mxu0 %vm21_vm0, %v16_v7 }
  0xdf   :  { %v227_v9 = vpop.f32.mrb[0].mxu0 }
  0xe0   :  { %v94_v10 = vpop.f32.mrb[1].mxu0 }
  0xe1   :  { %230 = vmatprep.mubr.msk.f32.mxu1 %vm104_vm1, %v94_v10 }
  0xe2   :  { %231 = vmatmul.mubr.msk.f32.vlgmr.msra.gmra.mrb[0].mxu1 %vm104_vm1, %v227_v9 }
 0x1b5   :  { %v232_v11 = vpop.f32.mrb[0].mxu1 }
 0x1b6   :  { %187 = vst.msk [vmem:[#allocation2 + $0x8] sm:$0xff] %vm21_vm0, %v232_v11  ;;  %v177_v12 = vpop.f32.mrb[1].mxu1 }
 0x1b7   :  { %186 = vst.msk [vmem:[#allocation2] sm:$0xff] %vm21_vm0, %v177_v12 }
 0x1b8   :  { %255 = shalt.err (!%p252_p4)
}
 0x1b9   :  { %s256_s28 = scalar_lea.hbm %s331_s3, 256 }
 0x1ba   :  { %p257_p5 = scmp.ne.s32.totalorder %s331_s3, %s256_s28  ;;  %p260_p6 = scmp.lt.u32.totalorder %s256_s28, %s331_s3 }
 0x1bc   :  { %p262_p7 = pnand %p260_p6, %p257_p5 }
 0x1be   :  { %265 = shalt.err (!%p262_p7)
}
 0x1bf   :  { %s269_s6 = smov 128   ;;  %s270_s7 = smov 8  }
 0x1c0   :  { %199 = dma.vmem_to_hbm [thread:$0]  %s194_s26, 256, %s331_s3, [#allocation3], %s269_s6, %s269_s6, %s270_s7  }
 0x1c1   :  { %266 = dma.done.wait [#allocation3], 256  }
 0x1c2   :  { %267 = vsyncadd [#allocation3], 4294967040 }
 0x1c3   :  { %203 = vsyncpa [#allocation3], 1 }

// kernel: tpu_custom_call.1
= control target key start
LH: loop header
LB: loop body
LE: loop exit
PB: predicated region body
PF: predicated region fallthrough
CT: control target
= control target key end

     0   :  { %vm21_vm0 = vcmask 261120   ;;  %s328_s0 = inlined_call_operand.vmem [shape: f32[16,32], index: 0, kind: input, shape index: {}]   ;;  %s329_s1 = inlined_call_operand.vmem [shape: f32[32,8], index: 1, kind: input, shape index: {}]   ;;  %s330_s2 = inlined_call_operand.vmem [shape: f32[8,32], index: 2, kind: input, shape index: {}]   ;;  %s331_s3 = inlined_call_operand.hbm [shape: f32[16,32], index: 3, kind: output, shape index: {}]  }
   0x1   :  { %v17_v0 = vld [vmem:[%s329_s1] sm:$0xff]  ;;  %v18_v1 = vld [vmem:[%s329_s1 + $0x8] sm:$0xff]  ;;  %v19_v2 = vld [vmem:[%s329_s1 + $0x10] sm:$0xff] }
   0x2   :  { %v233_v3 = vpack.c.bf16 %v18_v1, %v17_v0  ;;  %v20_v4 = vld [vmem:[%s329_s1 + $0x18] sm:$0xff]  ;;  %v15_v5 = vld [vmem:[%s328_s0] sm:$0xff] }
   0x3   :  { %v237_v6 = vpack.c.bf16 %v20_v4, %v19_v2  ;;  %225 = vmatprep.mubr.msk.f32.mxu0 %vm21_vm0, %v15_v5 }
   0x4   :  { %8 = vsyncpa [#allocation3], 0  ;;  %234 = vmatprep.subr.bf16.mxu0 %v233_v3  ;;  %v16_v7 = vld [vmem:[%s328_s0 + $0x8] sm:$0xff]  ;;  %v103_v8 = vld [vmem:[%s330_s2] sm:$0xff]  ;;  %vm104_vm1 = vcmask 64512   ;;  %s268_s25 = smov [#allocation2]  }
   0x5   :  { %236 = vmatpush3.bf16.msra.mxu0 %v233_v3  ;;  %228 = vmatprep.subr.mxu1 %v103_v8  ;;  %s193_s26 = sshll.u32 %s268_s25, 4  ;;  %s194_s26 = int_to_ptr.vmem [resolvable:$true] %s193_s26 }
   0x6   :  { %238 = vmatprep.subr.bf16.mxu0 %v237_v6  ;;  %229 = vmatpush3.msra.mxu1 %v103_v8  ;;  %s244_s0 = scalar_lea.vmem %s194_s26, 256  ;;  %p249_p1 = scmp.lt.s32.totalorder %s194_s26, %s194_s26 }
   0x7   :  { %p245_p0 = scmp.ne.s32.totalorder %s194_s26, %s244_s0  ;;  %p250_p2 = scmp.lt.s32.totalorder %s244_s0, %s244_s0 }
   0x9   :  { %240 = vmatpush3.bf16.msra.mxu0 %v237_v6  ;;  %p251_p3 = por %p250_p2, %p249_p1 }
   0xb   :  { %p252_p4 = pnand %p251_p3, %p245_p0 }
   0xc   :  { %226 = vmatmul.mubr.msk.f32.vlgmr.msra.gmra.mrb[0].mxu0 %vm21_vm0, %v16_v7 }
  0xdf   :  { %v227_v9 = vpop.f32.mrb[0].mxu0 }
  0xe0   :  { %v94_v10 = vpop.f32.mrb[1].mxu0 }
  0xe1   :  { %230 = vmatprep.mubr.msk.f32.mxu1 %vm104_vm1, %v94_v10 }
  0xe2   :  { %231 = vmatmul.mubr.msk.f32.vlgmr.msra.gmra.mrb[0].mxu1 %vm104_vm1, %v227_v9 }
 0x1b5   :  { %v232_v11 = vpop.f32.mrb[0].mxu1 }
 0x1b6   :  { %187 = vst.msk [vmem:[#allocation2 + $0x8] sm:$0xff] %vm21_vm0, %v232_v11  ;;  %v177_v12 = vpop.f32.mrb[1].mxu1 }
 0x1b7   :  { %186 = vst.msk [vmem:[#allocation2] sm:$0xff] %vm21_vm0, %v177_v12 }
 0x1b8   :  { %255 = shalt.err (!%p252_p4)
}
 0x1b9   :  { %s256_s28 = scalar_lea.hbm %s331_s3, 256 }
 0x1ba   :  { %p257_p5 = scmp.ne.s32.totalorder %s331_s3, %s256_s28  ;;  %p260_p6 = scmp.lt.u32.totalorder %s256_s28, %s331_s3 }
 0x1bc   :  { %p262_p7 = pnand %p260_p6, %p257_p5 }
 0x1be   :  { %265 = shalt.err (!%p262_p7)
}
 0x1bf   :  { %s269_s6 = smov 128   ;;  %s270_s7 = smov 8  }
 0x1c0   :  { %199 = dma.vmem_to_hbm [thread:$0]  %s194_s26, 256, %s331_s3, [#allocation3], %s269_s6, %s269_s6, %s270_s7  }
 0x1c1   :  { %266 = dma.done.wait [#allocation3], 256  }
 0x1c2   :  { %267 = vsyncadd [#allocation3], 4294967040 }
 0x1c3   :  { %203 = vsyncpa [#allocation3], 1 }

</bundles_post_ra>
